<compile_context>
chip_gen: v7x
topology: tpu7x:2x2x1
jax: 0.10.0
libtpu: 0.0.40
codegen_flags: <defaults>
</compile_context>

<pallas_src>
import functools

import jax
import jax.numpy as jnp
from jax import lax
from jax.experimental import pallas as pl
from jax.experimental.pallas import tpu as pltpu

_LANE = 128  # TPU vreg lane width; batch tiles are multiples of this.


def _autoencoder_kernel(tanh_flags, *refs):
    """Fused encode->decode forward on one batch tile.

    refs = (x, w0, b0, w1, b1, ..., out_t) with
      x     : (TM, d_in)         -- native input layout, batch on sublanes
      w_i   : (fan_out, fan_in)  -- PyTorch orientation
      b_i   : (fan_out, 1)
      out_t : (d_in, TM)         -- transposed output, batch on lanes (lane-dense store)
    tanh_flags[i] says whether layer i is followed by Tanh.
    """
    x_ref = refs[0]
    out_ref = refs[-1]
    param_refs = refs[1:-1]
    n_layers = len(param_refs) // 2
    assert n_layers == len(tanh_flags)

    # First layer folds the (batch, feature) -> (feature, batch) transpose into the
    # contraction: (fan_out, fan_in) x (TM, fan_in), contracting the last dims,
    # yields (fan_out, TM) with the batch on lanes from here on.
    w0 = param_refs[0][...]
    b0 = param_refs[1][...]
    h = lax.dot_general(
        w0, x_ref[...],
        dimension_numbers=(((1,), (1,)), ((), ())),
        preferred_element_type=jnp.float32) + b0
    if tanh_flags[0]:
        h = jnp.tanh(h)

    for i in range(1, n_layers):
        w = param_refs[2 * i][...]       # (fan_out, fan_in)
        b = param_refs[2 * i + 1][...]   # (fan_out, 1) -> broadcasts along lanes
        # (fan_out, fan_in) @ (fan_in, TM) -> (fan_out, TM): N = TM is lane-dense.
        h = jnp.dot(w, h, preferred_element_type=jnp.float32) + b
        if tanh_flags[i]:
            h = jnp.tanh(h)

    out_ref[...] = h.astype(out_ref.dtype)


def make_autoencoder_params(key, d_in, hs, d_encoded, dtype=jnp.float32):
    """Deterministic PyTorch-style init: U(-1/sqrt(fan_in), 1/sqrt(fan_in)).

    Returns (params, tanh_flags); params is a flat list [w0, b0, w1, b1, ...] with
    w_i of shape (fan_out, fan_in) (PyTorch layout) and b_i of shape (fan_out, 1).
    """
    hs = list(hs)
    enc_dims = [d_in] + hs + [d_encoded]
    dec_dims = [d_encoded] + hs[::-1] + [d_in]

    layer_dims = []
    tanh_flags = []
    for dims in (enc_dims, dec_dims):
        for i in range(len(dims) - 1):
            layer_dims.append((dims[i], dims[i + 1]))
            tanh_flags.append(i < len(dims) - 2)  # Tanh after all but the last layer

    params = []
    for (fan_in, fan_out) in layer_dims:
        key, kw, kb = jax.random.split(key, 3)
        bound = 1.0 / (fan_in ** 0.5)
        w = jax.random.uniform(kw, (fan_out, fan_in), dtype, minval=-bound, maxval=bound)
        b = jax.random.uniform(kb, (fan_out, 1), dtype, minval=-bound, maxval=bound)
        params.extend([w, b])
    return params, tuple(tanh_flags)


def _fuse_activationless_layers(params, tanh_flags):
    """Host-side algebraic fusion of Linear layers with no activation between them.

    W2 @ (W1 @ h + b1) + b2 == (W2 @ W1) @ h + (W2 @ b1 + b2).
    For this module it fuses the encoder's final projection into the decoder's first
    layer (6 layers -> 5).  Same FLOPs, one fewer serial MXU round-trip per tile.
    """
    ws = list(params[0::2])
    bs = list(params[1::2])
    flags = list(tanh_flags)

    out_w, out_b, out_f = [], [], []
    pend_w, pend_b = None, None
    for idx, (w, b, f) in enumerate(zip(ws, bs, flags)):
        if pend_w is not None:
            b = w @ pend_b + b
            w = w @ pend_w
            pend_w, pend_b = None, None
        last = idx == len(ws) - 1
        if f or last:
            out_w.append(w)
            out_b.append(b)
            out_f.append(f)
        else:
            pend_w, pend_b = w, b   # activation-less: fold into the next Linear

    fused = []
    for w, b in zip(out_w, out_b):
        fused.extend([w, b])
    return fused, tuple(out_f)


def autoencoder_forward(x, params, tanh_flags, *, tm=16384):
    """Encode->decode forward of an (B, d_in) batch via one pipelined Pallas call.

    The batch is streamed in its native layout (no pad / no input transpose); the
    kernel emits the lane-dense transposed (d_in, B) result, which is transposed back
    once on the host.  (Best case: have the surrounding pipeline consume the
    (features, batch) layout directly and drop even that transpose.)
    """
    B, d_in = x.shape

    # Fuse the activation-less layer chain (encoder tail -> decoder head).
    fused_params, fused_flags = _fuse_activationless_layers(params, tanh_flags)
    ws = fused_params[0::2]

    # Batch tile: multiple of 128 lanes, <= lane-padded batch, and <= ~half the batch
    # so the grid keeps >= 2 steps (v7x megacore sharding of the parallel axis).
    b_pad128 = pl.cdiv(B, _LANE) * _LANE
    tm_max = b_pad128
    if b_pad128 >= 2 * _LANE:
        tm_max = (b_pad128 // 2 // _LANE) * _LANE
    tm = max(_LANE, (min(tm, tm_max) // _LANE) * _LANE)
    grid = (pl.cdiv(B, tm),)

    # Per-step VMEM budget: double-buffered in/out blocks + layer intermediates + params.
    io_bytes = 2 * (tm * d_in * 4) + 2 * (d_in * tm * 4)
    inter_bytes = sum(int(w.shape[0]) * tm * 4 for w in ws)
    param_bytes = 2 * sum(int(p.size) * 4 for p in fused_params)
    vmem_limit = int(min(max(2 * (io_bytes + inter_bytes + param_bytes), 16 << 20), 48 << 20))

    in_specs = [pl.BlockSpec((tm, d_in), lambda i: (i, 0))]   # batch stream, native layout
    for p in fused_params:
        # Full-array block + constant index_map => weight/bias stays VMEM-resident.
        in_specs.append(pl.BlockSpec(p.shape, lambda i: (0, 0)))
    out_specs = pl.BlockSpec((d_in, tm), lambda i: (0, i))    # lane-dense output store

    flops = 2 * B * sum(int(w.shape[0]) * int(w.shape[1]) for w in ws)
    transcendentals = B * sum(int(w.shape[0]) for w, f in zip(ws, fused_flags) if f)
    bytes_accessed = 2 * B * d_in * 4 + sum(int(p.size) * 4 for p in fused_params)

    kernel = functools.partial(_autoencoder_kernel, fused_flags)
    out_t = pl.pallas_call(
        kernel,
        out_shape=jax.ShapeDtypeStruct((d_in, B), jnp.float32),
        grid=grid,
        in_specs=in_specs,
        out_specs=out_specs,
        compiler_params=pltpu.CompilerParams(
            dimension_semantics=("parallel",),    # megacore sharding on v7x
            vmem_limit_bytes=vmem_limit),
        cost_estimate=pl.CostEstimate(
            flops=int(flops),
            transcendentals=int(transcendentals),
            bytes_accessed=int(bytes_accessed)),
    )(x.astype(jnp.float32), *fused_params)

    return out_t.T.astype(x.dtype)


def _reference_forward(x, params, tanh_flags):
    """Pure-JAX reference (row-major, original unfused params, same math)."""
    h = x
    n_layers = len(params) // 2
    for i in range(n_layers):
        w = params[2 * i]        # (fan_out, fan_in)
        b = params[2 * i + 1]    # (fan_out, 1)
        h = h @ w.T + b[:, 0][None, :]
        if tanh_flags[i]:
            h = jnp.tanh(h)
    return h


if __name__ == "__main__":
    # Small shapes consistent with the module's forward (x: (batch, d_in)).
    # B=300 exercises the ragged last block (no host-side padding) and, with the
    # grid>=2 clamp, a multi-step (grid=(3,)) pipelined call.
    B, d_in, hs, d_encoded = 300, 16, [32, 8], 4

    key = jax.random.PRNGKey(0)
    key, kx, kp = jax.random.split(key, 3)
    x = jax.random.normal(kx, (B, d_in), jnp.float32)
    params, tanh_flags = make_autoencoder_params(kp, d_in, hs, d_encoded)

    out = autoencoder_forward(x, params, tanh_flags)
    out = jax.block_until_ready(out)

    ref = _reference_forward(x, params, tanh_flags)
    assert out.shape == (B, d_in), out.shape
    assert jnp.allclose(out, ref, atol=1e-5, rtol=1e-5), "mismatch vs pure-JAX reference"

    print("KERNEL_OK")
</pallas_src>

<mosaic_0001>
module attributes {stable_mosaic.version = 11 : i64} {
  func.func @_autoencoder_kernel(%arg0: i32, %arg1: memref<128x16xf32, #tpu.memory_space<vmem>>, %arg2: memref<32x16xf32, #tpu.memory_space<vmem>>, %arg3: memref<32x1xf32, #tpu.memory_space<vmem>>, %arg4: memref<8x32xf32, #tpu.memory_space<vmem>>, %arg5: memref<8x1xf32, #tpu.memory_space<vmem>>, %arg6: memref<8x8xf32, #tpu.memory_space<vmem>>, %arg7: memref<8x1xf32, #tpu.memory_space<vmem>>, %arg8: memref<32x8xf32, #tpu.memory_space<vmem>>, %arg9: memref<32x1xf32, #tpu.memory_space<vmem>>, %arg10: memref<16x32xf32, #tpu.memory_space<vmem>>, %arg11: memref<16x1xf32, #tpu.memory_space<vmem>>, %arg12: memref<16x128xf32, #tpu.memory_space<vmem>>) attributes {dimension_semantics = [#tpu.dimension_semantics<parallel>], iteration_bounds = array<i64: 3>, scalar_prefetch = 0 : i64, scratch_operands = 0 : i64, tpu.core_type = #tpu.core_type<tc>, window_params = [{transform_indices = @transform_0, window_bounds = array<i64: 128, 16>}, {pipeline_mode = #tpu.pipeline_mode<synchronous>, transform_indices = @transform_1, window_bounds = array<i64: 32, 16>}, {pipeline_mode = #tpu.pipeline_mode<synchronous>, transform_indices = @transform_2, window_bounds = array<i64: 32, 1>}, {pipeline_mode = #tpu.pipeline_mode<synchronous>, transform_indices = @transform_3, window_bounds = array<i64: 8, 32>}, {pipeline_mode = #tpu.pipeline_mode<synchronous>, transform_indices = @transform_4, window_bounds = array<i64: 8, 1>}, {pipeline_mode = #tpu.pipeline_mode<synchronous>, transform_indices = @transform_5, window_bounds = array<i64: 8, 8>}, {pipeline_mode = #tpu.pipeline_mode<synchronous>, transform_indices = @transform_6, window_bounds = array<i64: 8, 1>}, {pipeline_mode = #tpu.pipeline_mode<synchronous>, transform_indices = @transform_7, window_bounds = array<i64: 32, 8>}, {pipeline_mode = #tpu.pipeline_mode<synchronous>, transform_indices = @transform_8, window_bounds = array<i64: 32, 1>}, {pipeline_mode = #tpu.pipeline_mode<synchronous>, transform_indices = @transform_9, window_bounds = array<i64: 16, 32>}, {pipeline_mode = #tpu.pipeline_mode<synchronous>, transform_indices = @transform_10, window_bounds = array<i64: 16, 1>}, {transform_indices = @transform_11, window_bounds = array<i64: 16, 128>}]} {
    %c0 = arith.constant 0 : index
    %c0_0 = arith.constant 0 : index
    %0 = vector.load %arg2[%c0, %c0_0] : memref<32x16xf32, #tpu.memory_space<vmem>>, vector<32x16xf32>
    %c0_1 = arith.constant 0 : index
    %c0_2 = arith.constant 0 : index
    %1 = vector.load %arg3[%c0_1, %c0_2] : memref<32x1xf32, #tpu.memory_space<vmem>>, vector<32x1xf32>
    %c0_3 = arith.constant 0 : index
    %c0_4 = arith.constant 0 : index
    %2 = vector.load %arg1[%c0_3, %c0_4] : memref<128x16xf32, #tpu.memory_space<vmem>>, vector<128x16xf32>
    %cst = arith.constant dense<0.000000e+00> : vector<32x128xf32>
    %3 = tpu.matmul %0, %2, %cst {dimension_numbers = #tpu.dot_dimension_numbers<[1], [1], [0], [0], [0, 0, 1, 0], [], []>} : vector<32x16xf32>, vector<128x16xf32>, vector<32x128xf32> -> vector<32x128xf32>
    %4 = vector.broadcast %1 : vector<32x1xf32> to vector<32x128xf32>
    %5 = arith.addf %3, %4 : vector<32x128xf32>
    %6 = math.tanh %5 : vector<32x128xf32>
    %c0_5 = arith.constant 0 : index
    %c0_6 = arith.constant 0 : index
    %7 = vector.load %arg4[%c0_5, %c0_6] : memref<8x32xf32, #tpu.memory_space<vmem>>, vector<8x32xf32>
    %c0_7 = arith.constant 0 : index
    %c0_8 = arith.constant 0 : index
    %8 = vector.load %arg5[%c0_7, %c0_8] : memref<8x1xf32, #tpu.memory_space<vmem>>, vector<8x1xf32>
    %cst_9 = arith.constant dense<0.000000e+00> : vector<8x128xf32>
    %9 = tpu.matmul %7, %6, %cst_9 {dimension_numbers = #tpu.dot_dimension_numbers<[1], [0], [0], [1], [0, 0, 1, 1], [], []>} : vector<8x32xf32>, vector<32x128xf32>, vector<8x128xf32> -> vector<8x128xf32>
    %10 = vector.broadcast %8 : vector<8x1xf32> to vector<8x128xf32>
    %11 = arith.addf %9, %10 : vector<8x128xf32>
    %12 = math.tanh %11 : vector<8x128xf32>
    %c0_10 = arith.constant 0 : index
    %c0_11 = arith.constant 0 : index
    %13 = vector.load %arg6[%c0_10, %c0_11] : memref<8x8xf32, #tpu.memory_space<vmem>>, vector<8x8xf32>
    %c0_12 = arith.constant 0 : index
    %c0_13 = arith.constant 0 : index
    %14 = vector.load %arg7[%c0_12, %c0_13] : memref<8x1xf32, #tpu.memory_space<vmem>>, vector<8x1xf32>
    %cst_14 = arith.constant dense<0.000000e+00> : vector<8x128xf32>
    %15 = tpu.matmul %13, %12, %cst_14 {dimension_numbers = #tpu.dot_dimension_numbers<[1], [0], [0], [1], [0, 0, 1, 1], [], []>} : vector<8x8xf32>, vector<8x128xf32>, vector<8x128xf32> -> vector<8x128xf32>
    %16 = vector.broadcast %14 : vector<8x1xf32> to vector<8x128xf32>
    %17 = arith.addf %15, %16 : vector<8x128xf32>
    %18 = math.tanh %17 : vector<8x128xf32>
    %c0_15 = arith.constant 0 : index
    %c0_16 = arith.constant 0 : index
    %19 = vector.load %arg8[%c0_15, %c0_16] : memref<32x8xf32, #tpu.memory_space<vmem>>, vector<32x8xf32>
    %c0_17 = arith.constant 0 : index
    %c0_18 = arith.constant 0 : index
    %20 = vector.load %arg9[%c0_17, %c0_18] : memref<32x1xf32, #tpu.memory_space<vmem>>, vector<32x1xf32>
    %cst_19 = arith.constant dense<0.000000e+00> : vector<32x128xf32>
    %21 = tpu.matmul %19, %18, %cst_19 {dimension_numbers = #tpu.dot_dimension_numbers<[1], [0], [0], [1], [0, 0, 1, 1], [], []>} : vector<32x8xf32>, vector<8x128xf32>, vector<32x128xf32> -> vector<32x128xf32>
    %22 = vector.broadcast %20 : vector<32x1xf32> to vector<32x128xf32>
    %23 = arith.addf %21, %22 : vector<32x128xf32>
    %24 = math.tanh %23 : vector<32x128xf32>
    %c0_20 = arith.constant 0 : index
    %c0_21 = arith.constant 0 : index
    %25 = vector.load %arg10[%c0_20, %c0_21] : memref<16x32xf32, #tpu.memory_space<vmem>>, vector<16x32xf32>
    %c0_22 = arith.constant 0 : index
    %c0_23 = arith.constant 0 : index
    %26 = vector.load %arg11[%c0_22, %c0_23] : memref<16x1xf32, #tpu.memory_space<vmem>>, vector<16x1xf32>
    %cst_24 = arith.constant dense<0.000000e+00> : vector<16x128xf32>
    %27 = tpu.matmul %25, %24, %cst_24 {dimension_numbers = #tpu.dot_dimension_numbers<[1], [0], [0], [1], [0, 0, 1, 1], [], []>} : vector<16x32xf32>, vector<32x128xf32>, vector<16x128xf32> -> vector<16x128xf32>
    %28 = vector.broadcast %26 : vector<16x1xf32> to vector<16x128xf32>
    %29 = arith.addf %27, %28 : vector<16x128xf32>
    %c0_25 = arith.constant 0 : index
    %c0_26 = arith.constant 0 : index
    %30 = vector.load %arg12[%c0_25, %c0_26] : memref<16x128xf32, #tpu.memory_space<vmem>>, vector<16x128xf32>
    tpu.vector_store %arg12[%c0_25, %c0_26], %29 {strides = array<i32>} : memref<16x128xf32, #tpu.memory_space<vmem>>, vector<16x128xf32>,
    return
  }
  func.func @transform_0(%arg0: i32) -> (i32, i32) {
    %c0_i32 = arith.constant 0 : i32
    %c0_i32_0 = arith.constant 0 : i32
    return %arg0, %c0_i32 : i32, i32
  }
  func.func @transform_1(%arg0: i32) -> (i32, i32) {
    %c0_i32 = arith.constant 0 : i32
    %c0_i32_0 = arith.constant 0 : i32
    %c0_i32_1 = arith.constant 0 : i32
    return %c0_i32, %c0_i32_0 : i32, i32
  }
  func.func @transform_2(%arg0: i32) -> (i32, i32) {
    %c0_i32 = arith.constant 0 : i32
    %c0_i32_0 = arith.constant 0 : i32
    %c0_i32_1 = arith.constant 0 : i32
    return %c0_i32, %c0_i32_0 : i32, i32
  }
  func.func @transform_3(%arg0: i32) -> (i32, i32) {
    %c0_i32 = arith.constant 0 : i32
    %c0_i32_0 = arith.constant 0 : i32
    %c0_i32_1 = arith.constant 0 : i32
    return %c0_i32, %c0_i32_0 : i32, i32
  }
  func.func @transform_4(%arg0: i32) -> (i32, i32) {
    %c0_i32 = arith.constant 0 : i32
    %c0_i32_0 = arith.constant 0 : i32
    %c0_i32_1 = arith.constant 0 : i32
    return %c0_i32, %c0_i32_0 : i32, i32
  }
  func.func @transform_5(%arg0: i32) -> (i32, i32) {
    %c0_i32 = arith.constant 0 : i32
    %c0_i32_0 = arith.constant 0 : i32
    %c0_i32_1 = arith.constant 0 : i32
    return %c0_i32, %c0_i32_0 : i32, i32
  }
  func.func @transform_6(%arg0: i32) -> (i32, i32) {
    %c0_i32 = arith.constant 0 : i32
    %c0_i32_0 = arith.constant 0 : i32
    %c0_i32_1 = arith.constant 0 : i32
    return %c0_i32, %c0_i32_0 : i32, i32
  }
  func.func @transform_7(%arg0: i32) -> (i32, i32) {
    %c0_i32 = arith.constant 0 : i32
    %c0_i32_0 = arith.constant 0 : i32
    %c0_i32_1 = arith.constant 0 : i32
    return %c0_i32, %c0_i32_0 : i32, i32
  }
  func.func @transform_8(%arg0: i32) -> (i32, i32) {
    %c0_i32 = arith.constant 0 : i32
    %c0_i32_0 = arith.constant 0 : i32
    %c0_i32_1 = arith.constant 0 : i32
    return %c0_i32, %c0_i32_0 : i32, i32
  }
  func.func @transform_9(%arg0: i32) -> (i32, i32) {
    %c0_i32 = arith.constant 0 : i32
    %c0_i32_0 = arith.constant 0 : i32
    %c0_i32_1 = arith.constant 0 : i32
    return %c0_i32, %c0_i32_0 : i32, i32
  }
  func.func @transform_10(%arg0: i32) -> (i32, i32) {
    %c0_i32 = arith.constant 0 : i32
    %c0_i32_0 = arith.constant 0 : i32
    %c0_i32_1 = arith.constant 0 : i32
    return %c0_i32, %c0_i32_0 : i32, i32
  }
  func.func @transform_11(%arg0: i32) -> (i32, i32) {
    %c0_i32 = arith.constant 0 : i32
    %c0_i32_0 = arith.constant 0 : i32
    return %c0_i32, %arg0 : i32, i32
  }
}

</mosaic_0001>

<bundles_post_ra>
// kernel: tpu_custom_call.1
= control target key start
LH: loop header
LB: loop body
LE: loop exit
PB: predicated region body
PF: predicated region fallthrough
CT: control target
= control target key end

     0   :  { %16 = vsyncpa [#allocation3], 0  ;;  %s1722_s0 = inlined_call_operand.vmem [shape: f32[300,16], index: 0, kind: input, shape index: {}]   ;;  %s1723_s1 = inlined_call_operand.vmem [shape: f32[32,16], index: 1, kind: input, shape index: {}]   ;;  %s1724_s2 = inlined_call_operand.vmem [shape: f32[32,1], index: 2, kind: input, shape index: {}]   ;;  %s1725_s3 = inlined_call_operand.vmem [shape: f32[8,32], index: 3, kind: input, shape index: {}]   ;;  %s1726_s4 = inlined_call_operand.vmem [shape: f32[8,1], index: 4, kind: input, shape index: {}]   ;;  %s1727_s5 = inlined_call_operand.vmem [shape: f32[8,8], index: 5, kind: input, shape index: {}]   ;;  %s1728_s6 = inlined_call_operand.vmem [shape: f32[8,1], index: 6, kind: input, shape index: {}]   ;;  %s1729_s7 = inlined_call_operand.vmem [shape: f32[32,8], index: 7, kind: input, shape index: {}]   ;;  %s1730_s8 = inlined_call_operand.vmem [shape: f32[32,1], index: 8, kind: input, shape index: {}]   ;;  %s1731_s9 = inlined_call_operand.vmem [shape: f32[16,32], index: 9, kind: input, shape index: {}]   ;;  %s1732_s10 = inlined_call_operand.vmem [shape: f32[16,1], index: 10, kind: input, shape index: {}]   ;;  %s1733_s11 = inlined_call_operand.hbm [shape: f32[16,300], index: 11, kind: output, shape index: {}]  }
   0x1   :  { %18 = vsyncpa [#allocation3 + $0x1], 0  ;;  %s1478_s17 = smov 0   ;;  %s1480_s18 = smov 0  }
   0x2   :  { %s1482_s19 = smov 0   ;;  %s1484_s20 = smov 0  }
   0x3 LB: > { %s1499_s21 = sadd.s32 4294967295, %s1408_s20   ;;  %s1066_s22 = sadd.s32 4294967294, %s1408_s20   ;;  %s1408_s20 = sphi %s1484_s20, %s1743_s20   ;;  %s1404_s19 = sphi %s1482_s19, %s1742_s19   ;;  %s1400_s18 = sphi %s1480_s18, %s1741_s18   ;;  %s1396_s17 = sphi %s1478_s17, %s1740_s17  }
   0x4   : > { %s1503_s23 = sadd.s32 1, %s1408_s20   ;;  %s267_s24 = sadd.s32 1, %s1404_s19 }
   0x5   : > { %s264_s25 = ssub.s32 %s1408_s20, %s1503_s23  ;;  %p277_p0 = scmp.ne.s32.totalorder %s1404_s19, %s1400_s18 }
   0x6   : > { %p265_p1 = scmp.eq.s32.totalorder %s264_s25, 0  ;;  %p278_p2 = scmp.eq.s32.totalorder %s1499_s21, 2 }
   0x7   : > { %p283_p3 = scmp.ne.s32.totalorder %s1400_s18, %s1396_s17  ;;  %p284_p4 = scmp.eq.s32.totalorder %s1066_s22, 2 }
   0x8   : > { %s1514_s26 = scalar_select %p265_p1, %s1404_s19, %s267_s24  }
   0x9   : > { %p1516_p5 = por %p278_p2, %p277_p0  ;;  %p1520_p6 = por %p284_p4, %p283_p3 }
   0xa   : > { %1734 = sst [smem:[#allocation5_spill]] %s1514_s26  ;;  %p1069_p7 = scmp.ge.s32.totalorder %s1408_s20, 1 }
   0xb   : > { %p349_p8 = scmp.lt.s32.totalorder %s1408_s20, 4 }
   0xd   : > { %p350_p9 = pnand %p1069_p7, %p349_p8 }
   0xe   : > { %s1071_s29 = sshll.u32 (!%p350_p9), %s1499_s21, 4  ;;  %vm451_vm0 = vcmask (!%p350_p9), 130048   ;;  %v407_v0 = vld [vmem:[%s1723_s1] sm:$0xff] (!%p350_p9)  ;;  %v1410_v1 = vmov (!%p350_p9), 0   ;;  %v413_v3 = vld [vmem:[%s1724_s2 + $0x10] sm:$0xff] (!%p350_p9)  ;;  %v412_v4 = vld [vmem:[%s1724_s2 + $0x8] sm:$0xff] (!%p350_p9) }
   0xf   : > { %353 = sbr.rel (%p350_p9) target bundleno = 1247 (0x4df), region = 64  ;;  %p398_p10 = scmp.lt.s32.totalorder (!%p350_p9), %s1071_s29, 37  ;;  %1175 = vmatprep.mubr.msk.f32.mxu0 (!%p350_p9), %vm451_vm0, %v407_v0  ;;  %1324 = vset.pattern.permute.xlu0 (!%p350_p9), %v1410_v1  ;;  %v411_v2 = vld [vmem:[%s1724_s2] sm:$0xff] (!%p350_p9)  ;;  %v414_v5 = vld [vmem:[%s1724_s2 + $0x18] sm:$0xff] (!%p350_p9)  ;;  %vm1550_vm1 = vmpackc.low (!%p350_p9), %vm451_vm0, %vm451_vm0  ;;  %v1411_v42 = vmov (!%p350_p9), 0.0|0.0   ;;  %vm1412_vm2 = vmmov (!%p350_p9), 0  }
  0x10   : > { %433 = vperm.xlu0 (!%p350_p9), %1324, %v411_v2   ;;  %1325 = vset.pattern.permute.xlu1 (!%p350_p9), %v1410_v1  ;;  %v602_v7 = vld [vmem:[%s1726_s4] sm:$0xff] (!%p350_p9)  ;;  %v770_v16 = vld [vmem:[%s1730_s8 + $0x8] sm:$0xff] (!%p350_p9)  ;;  %v771_v19 = vld [vmem:[%s1730_s8 + $0x10] sm:$0xff] (!%p350_p9)  ;;  %v1413_v43 = vmov (!%p350_p9), 0.0   ;;  %vm608_vm3 = vcmask (!%p350_p9), 261120   ;;  %vm690_vm4 = vcmask (!%p350_p9), 64512  }
  0x11   : > { %443 = vperm.xlu1 (!%p350_p9), %1325, %v413_v3   ;;  %v684_v13 = vld [vmem:[%s1728_s6] sm:$0xff] (!%p350_p9)  ;;  %v772_v21 = vld [vmem:[%s1730_s8 + $0x18] sm:$0xff] (!%p350_p9)  ;;  %v897_v23 = vld [vmem:[%s1732_s10 + $0x8] sm:$0xff] (!%p350_p9)  ;;  %1264 = vmatprep.subr.bf16.mxu1 (!%p350_p9), %v1411_v42  ;;  %s390_s25 = sand.u32 (!%p350_p9), 1, %s1400_s18   ;;  %s1414_s22 = smov (!%p350_p9), [#allocation2]  }
  0x12   : > { %v769_v15 = vld [vmem:[%s1730_s8] sm:$0xff] (!%p350_p9)  ;;  %v408_v39 = vld [vmem:[%s1723_s1 + $0x8] sm:$0xff] (!%p350_p9)  ;;  %v409_v40 = vld [vmem:[%s1723_s1 + $0x10] sm:$0xff] (!%p350_p9)  ;;  %1189 = vmatprep.mubr.msk.f32.mxu1 (!%p350_p9), %vm1412_vm2, %v1413_v43  ;;  %s1070_s30 = sshll.u32 (!%p350_p9), %s390_s25, 4  ;;  %s1350_s24 = sshll.u32 (!%p350_p9), %s1414_s22, 4  ;;  %s1351_s24 = int_to_ptr.vmem [resolvable:$false] %s1350_s24 }
  0x13   : > { %v896_v22 = vld [vmem:[%s1732_s10] sm:$0xff] (!%p350_p9)  ;;  %v410_v41 = vld [vmem:[%s1723_s1 + $0x18] sm:$0xff] (!%p350_p9) }
  0x14   : > { %438 = vperm.xlu0 (!%p350_p9), %1324, %v412_v4   ;;  %v601_v62 = vld [vmem:[%s1725_s3] sm:$0xff] (!%p350_p9) }
  0x15   : > { %448 = vperm.xlu1 (!%p350_p9), %1325, %v414_v5   ;;  %v683_v3 = vld [vmem:[%s1727_s5] sm:$0xff] (!%p350_p9) }
  0x16   : > { %s1745_s29 = smov (!%p398_p10, %s1071_s29), 37  ;;  %v765_v5 = vld [vmem:[%s1729_s7] sm:$0xff] }
  0x17   : > { %s1072_s12 = sshll.u32 %s1745_s29, 3  ;;  %s1681_s29 = scalar_lea.sflag [#allocation3], %s390_s25 }
  0x18   : > { %s1546_s14 = scalar_lea.vmem %s1722_s0, %s1072_s12  ;;  %605 = vperm.xlu0 %1324, %v602_v7   ;;  %s392_s12 = scalar_lea.vmem [#allocation2], %s1070_s30 }
  0x19   : > { %v415_v8 = vld [vmem:[%s1546_s14] sm:$0xff]  ;;  %v416_v9 = vld [vmem:[%s1546_s14 + $0x8] sm:$0xff]  ;;  %v417_v10 = vld [vmem:[%s1546_s14 + $0x10] sm:$0xff]  ;;  %687 = vperm.xlu1 %1325, %v684_v13   ;;  %s1004_s13 = sshll.u32 %s392_s12, 4  ;;  %s1352_s30 = scalar_lea.vmem %s1351_s24, 512  ;;  %s1674_s13 = int_to_ptr.vmem [resolvable:$true] %s1004_s13 }
  0x1a   : > { %v1216_v11 = vpack.c.bf16 %v416_v9, %v415_v8  ;;  %v418_v12 = vld [vmem:[%s1546_s14 + $0x18] sm:$0xff]  ;;  %v419_v17 = vld [vmem:[%s1546_s14 + $0x20] sm:$0xff]  ;;  %v420_v18 = vld [vmem:[%s1546_s14 + $0x28] sm:$0xff]  ;;  %p1353_p0 = scmp.lt.s32.totalorder %s1674_s13, %s1351_s24 }
  0x1b   : > { %v1222_v14 = vpack.c.bf16 %v418_v12, %v417_v10  ;;  %v1228_v20 = vpack.c.bf16 %v420_v18, %v419_v17  ;;  %v421_v24 = vld [vmem:[%s1546_s14 + $0x30] sm:$0xff]  ;;  %v422_v25 = vld [vmem:[%s1546_s14 + $0x38] sm:$0xff]  ;;  %v423_v27 = vld [vmem:[%s1546_s14 + $0x40] sm:$0xff] }
  0x1c   : > { %1218 = vmatprep.subr.msk.bf16.mxu0 %vm1550_vm1, %v1216_v11  ;;  %775 = vperm.xlu0 %1324, %v769_v15   ;;  %v1234_v26 = vpack.c.bf16 %v422_v25, %v421_v24  ;;  %v424_v28 = vld [vmem:[%s1546_s14 + $0x48] sm:$0xff]  ;;  %v425_v30 = vld [vmem:[%s1546_s14 + $0x50] sm:$0xff]  ;;  %v426_v31 = vld [vmem:[%s1546_s14 + $0x58] sm:$0xff] }
  0x1d   : > { %1221 = vmatpush3.bf16.xpose.msk.msra.mxu0 %vm1550_vm1, %v1216_v11  ;;  %780 = vperm.xlu1 %1325, %v770_v16   ;;  %v1240_v29 = vpack.c.bf16 %v424_v28, %v423_v27  ;;  %v1246_v32 = vpack.c.bf16 %v426_v31, %v425_v30  ;;  %v427_v33 = vld [vmem:[%s1546_s14 + $0x60] sm:$0xff]  ;;  %v428_v34 = vld [vmem:[%s1546_s14 + $0x68] sm:$0xff]  ;;  %v429_v36 = vld [vmem:[%s1546_s14 + $0x70] sm:$0xff] }
  0x1e   : > { %1224 = vmatprep.subr.msk.bf16.mxu0 %vm1550_vm1, %v1222_v14  ;;  %v1252_v35 = vpack.c.bf16 %v428_v34, %v427_v33  ;;  %v430_v37 = vld [vmem:[%s1546_s14 + $0x78] sm:$0xff]  ;;  %v766_v11 = vld [vmem:[%s1729_s7 + $0x8] sm:$0xff]  ;;  %v767_v12 = vld [vmem:[%s1729_s7 + $0x10] sm:$0xff]  ;;  %s1102_s14 = sshll.u32 %s1499_s21, 7  ;;  %s1346_s21 = scalar_lea.vmem %s1674_s13, 256 }
  0x1f   : > { %v1258_v38 = vpack.c.bf16 %v430_v37, %v429_v36  ;;  %v768_v13 = vld [vmem:[%s1729_s7 + $0x18] sm:$0xff]  ;;  %v895_v33 = vld [vmem:[%s1731_s9 + $0x8] sm:$0xff]  ;;  %s1679_s26 = scalar_lea.hbm %s1733_s11, %s1102_s14  ;;  %p1347_p11 = scmp.ne.s32.totalorder %s1674_s13, %s1346_s21 }
  0x20   : > { %785 = vperm.xlu0 %1324, %v771_v19   ;;  %p1354_p1 = scmp.lt.s32.totalorder %s1352_s30, %s1346_s21 }
  0x21   : > { %790 = vperm.xlu1 %1325, %v772_v21   ;;  %p1348_p12 = pnand %p1347_p11, %p1516_p5 }
  0x22   : > { %p1355_p2 = por %p1354_p1, %p1353_p0 }
  0x23   : > { %p1349_p13 = pneg %p1348_p12 }
  0x24   : > { %900 = vperm.xlu0 %1324, %v896_v22  }
  0x25   : > { %1227 = vmatpush3.bf16.xpose.msk.msra.mxu0 %vm1550_vm1, %v1222_v14  ;;  %905 = vperm.xlu1 %1325, %v897_v23   ;;  %v894_v14 = vld [vmem:[%s1731_s9] sm:$0xff]  ;;  %p1356_p3 = pnand %p1355_p2, %p1349_p13 }
  0x26   : > { %1230 = vmatprep.subr.msk.bf16.mxu0 %vm1550_vm1, %v1228_v20 }
  0x2d   : > { %1233 = vmatpush3.bf16.xpose.msk.msra.mxu0 %vm1550_vm1, %v1228_v20 }
  0x2e   : > { %1236 = vmatprep.subr.msk.bf16.mxu0 %vm1550_vm1, %v1234_v26 }
  0x35   : > { %1239 = vmatpush3.bf16.xpose.msk.msra.mxu0 %vm1550_vm1, %v1234_v26 }
  0x36   : > { %1242 = vmatprep.subr.msk.bf16.mxu0 %vm1550_vm1, %v1240_v29 }
  0x3d   : > { %1245 = vmatpush3.bf16.xpose.msk.msra.mxu0 %vm1550_vm1, %v1240_v29 }
  0x3e   : > { %1248 = vmatprep.subr.msk.bf16.mxu0 %vm1550_vm1, %v1246_v32 }
  0x45   : > { %1251 = vmatpush3.bf16.xpose.msk.msra.mxu0 %vm1550_vm1, %v1246_v32 }
  0x46   : > { %1254 = vmatprep.subr.msk.bf16.mxu0 %vm1550_vm1, %v1252_v35 }
  0x4d   : > { %1257 = vmatpush3.bf16.xpose.msk.msra.mxu0 %vm1550_vm1, %v1252_v35 }
  0x4e   : > { %1260 = vmatprep.subr.msk.bf16.mxu0 %vm1550_vm1, %v1258_v38 }
  0x55   : > { %1263 = vmatpush3.bf16.xpose.msk.msra.mxu0 %vm1550_vm1, %v1258_v38 }
  0x5c   : > { %1176 = vmatmul.mubr.msk.f32.vlgmr.msra.gmra.mrb[0].mxu0 %vm451_vm0, %v408_v39 }
  0x5d   : > { %1178 = vmatprep.mubr.msk.f32.mxu0 %vm451_vm0, %v409_v40 }
  0x60   : > { %1179 = vmatmul.mubr.msk.f32.gmra.mrb[2].mxu0 %vm451_vm0, %v410_v41 }
  0x8f   : > { %v434_v44 = vpop.permute.xlu0 %433 }
  0x90   : > { %v444_v45 = vpop.permute.xlu1 %443 }
  0x93   : > { %v439_v46 = vpop.permute.xlu0 %438 }
  0x94   : > { %v449_v51 = vpop.permute.xlu1 %448 }
  0x97   : > { %v606_v63 = vpop.permute.xlu0 %605 }
  0x98   : > { %v688_v6 = vpop.permute.xlu1 %687 }
  0x9b   : > { %v776_v16 = vpop.permute.xlu0 %775 }
  0x9c   : > { %v781_v15 = vpop.permute.xlu1 %780 }
  0x9f   : > { %v786_v23 = vpop.permute.xlu0 %785 }
  0xa0   : > { %v791_v21 = vpop.permute.xlu1 %790 }
  0xa3   : > { %v901_v36 = vpop.permute.xlu0 %900 }
  0xa4   : > { %v906_v34 = vpop.permute.xlu1 %905 }
 0x12f   : > { %v1177_v47 = vpop.f32.mrb[0].mxu0 }
 0x130   : > { %v584_v48 = vadd.f32 %v1177_v47, %v439_v46  ;;  %v578_v49 = vpop.f32.mrb[1].mxu0 }
 0x131   : > { %v579_v50 = vadd.f32 %v578_v49, %v434_v44 }
 0x132   : > { %1326 = vtanh.f32 %v584_v48 }
 0x133   : > { %1328 = vtanh.f32 %v579_v50  ;;  %v1180_v52 = vpop.f32.mrb[2].mxu0 }
 0x134   : > { %v594_v53 = vadd.f32 %v1180_v52, %v449_v51  ;;  %v588_v54 = vpop.f32.mrb[3].mxu0 }
 0x135   : > { %v589_v55 = vadd.f32 %v588_v54, %v444_v45 }
 0x136   : > { %1330 = vtanh.f32 %v594_v53 }
 0x137   : > { %1332 = vtanh.f32 %v589_v55 }
 0x13c   : > { %v1327_v56 = vpop.eup %1326 }
 0x13d   : > { %v1329_v57 = vpop.eup %1328 }
 0x13e   : > { %v1265_v58 = vpack.c.bf16 %v1327_v56, %v1329_v57 }
 0x140   : > { %v1331_v59 = vpop.eup %1330  ;;  %1266 = vmatpush3.bf16.msra.mxu1 %v1265_v58 }
 0x141   : > { %v1333_v60 = vpop.eup %1332  ;;  %1267 = vmatprep.subr.bf16.mxu1 %v1411_v42 }
 0x142   : > { %v1268_v61 = vpack.c.bf16 %v1331_v59, %v1333_v60 }
 0x144   : > { %1269 = vmatpush3.bf16.msra.mxu1 %v1268_v61 }
 0x145   : > { %1192 = vmatprep.subr.mxu1 %v1413_v43 }
 0x147   : > { %1190 = vmatmul.mubr.msk.f32.vlgmr.msra.gmra.mrb[0].mxu1 %vm608_vm3, %v601_v62 }
 0x148   : > { %1194 = vmatprep.mubr.msk.f32.mxu1 %vm1412_vm2, %v1413_v43 }
 0x21a   : > { %v678_v0 = vpop.f32.mrb[0].mxu1 }
 0x21b   : > { %v679_v1 = vadd.f32 %v678_v0, %v606_v63  ;;  %v1191_v2 = vpop.f32.mrb[1].mxu1 }
 0x21d   : > { %1334 = vtanh.f32 %v679_v1 }
 0x227   : > { %v1335_v4 = vpop.eup %1334 }
 0x228   : > { %1193 = vmatpush3.msra.mxu1 %v1335_v4 }
 0x229   : > { %1195 = vmatmul.mubr.msk.f32.vlgmr.msra.gmra.mrb[2].mxu1 %vm690_vm4, %v683_v3 }
 0x22a   : > { %1199 = vmatprep.mubr.msk.f32.mxu1 %vm690_vm4, %v765_v5 }
 0x2fc   : > { %v760_v7 = vpop.f32.mrb[2].mxu1 }
 0x2fd   : > { %v761_v8 = vadd.f32 %v760_v7, %v688_v6  ;;  %v1196_v9 = vpop.f32.mrb[3].mxu1 }
 0x2ff   : > { %1336 = vtanh.f32 %v761_v8 }
 0x309   : > { %v1337_v10 = vpop.eup %1336 }
 0x30a   : > { %1197 = vmatprep.subr.mxu1 %v1337_v10 }
 0x30b   : > { %1198 = vmatpush3.msra.mxu1 %v1337_v10 }
 0x30c   : > { %1200 = vmatmul.mubr.msk.f32.vlgmr.msra.gmra.mrb[4].mxu1 %vm690_vm4, %v766_v11 }
 0x30d   : > { %1202 = vmatprep.mubr.msk.f32.mxu1 %vm690_vm4, %v767_v12 }
 0x310   : > { %1203 = vmatmul.mubr.msk.f32.gmra.mrb[6].mxu1 %vm690_vm4, %v768_v13 }
 0x311   : > { %1213 = vmatprep.mubr.msk.f32.mxu1 %vm608_vm3, %v894_v14 }
 0x3df   : > { %v1201_v17 = vpop.f32.mrb[4].mxu1 }
 0x3e0   : > { %v877_v18 = vadd.f32 %v1201_v17, %v781_v15  ;;  %v871_v19 = vpop.f32.mrb[5].mxu1 }
 0x3e1   : > { %v872_v20 = vadd.f32 %v871_v19, %v776_v16 }
 0x3e2   : > { %1338 = vtanh.f32 %v877_v18 }
 0x3e3   : > { %1340 = vtanh.f32 %v872_v20  ;;  %v1204_v22 = vpop.f32.mrb[6].mxu1 }
 0x3e4   : > { %v887_v24 = vadd.f32 %v1204_v22, %v791_v21  ;;  %v881_v25 = vpop.f32.mrb[7].mxu1 }
 0x3e5   : > { %v882_v26 = vadd.f32 %v881_v25, %v786_v23 }
 0x3e6   : > { %1342 = vtanh.f32 %v887_v24 }
 0x3e7   : > { %1344 = vtanh.f32 %v882_v26 }
 0x3ec   : > { %v1339_v27 = vpop.eup %1338 }
 0x3ed   : > { %v1341_v28 = vpop.eup %1340 }
 0x3ee   : > { %v1270_v29 = vpack.c.bf16 %v1339_v27, %v1341_v28 }
 0x3f0   : > { %v1343_v30 = vpop.eup %1342  ;;  %1271 = vmatprep.subr.bf16.mxu1 %v1270_v29 }
 0x3f1   : > { %v1345_v31 = vpop.eup %1344  ;;  %1273 = vmatpush3.bf16.msra.mxu1 %v1270_v29 }
 0x3f2   : > { %v1274_v32 = vpack.c.bf16 %v1343_v30, %v1345_v31 }
 0x3f4   : > { %1275 = vmatprep.subr.bf16.mxu1 %v1274_v32 }
 0x3f5   : > { %1277 = vmatpush3.bf16.msra.mxu1 %v1274_v32 }
 0x3f8   : > { %1214 = vmatmul.mubr.msk.f32.vlgmr.msra.gmra.mrb[8].mxu1 %vm608_vm3, %v895_v33 }
 0x4cb   : > { %v1215_v35 = vpop.f32.mrb[8].mxu1 }
 0x4cc   : > { %v986_v37 = vadd.f32 %v1215_v35, %v906_v34  ;;  %v980_v38 = vpop.f32.mrb[9].mxu1 }
 0x4cd   : > { %v981_v39 = vadd.f32 %v980_v38, %v901_v36 }
 0x4ce   : > { %990 = vst [vmem:[%s392_s12 + $0x8] sm:$0xff] %v986_v37 }
 0x4cf   : > { %989 = vst [vmem:[%s392_s12] sm:$0xff] %v981_v39 }
 0x4d0   : > { %1359 = shalt.err (!%p1356_p3)
}
 0x4d1   : > { %s1360_s25 = scalar_lea.hbm %s1679_s26, 256  ;;  %s1364_s15 = scalar_lea.hbm %s1733_s11, 768 }
 0x4d2   : > { %p1361_p4 = scmp.ne.s32.totalorder %s1679_s26, %s1360_s25  ;;  %p1365_p9 = scmp.lt.u32.totalorder %s1679_s26, %s1733_s11 }
 0x4d3   : > { %p1366_p10 = scmp.lt.u32.totalorder %s1364_s15, %s1360_s25  ;;  %p1368_p12 = scmp.lt.u32.totalorder %s1360_s25, %s1679_s26 }
 0x4d4   : > { %p1362_p7 = pnand %p1361_p4, %p1516_p5 }
 0x4d5   : > { %p1367_p11 = por %p1366_p10, %p1365_p9 }
 0x4d6   : > { %p1363_p8 = pneg %p1362_p7 }
 0x4d7   : > { %p1369_p13 = por %p1368_p12, %p1367_p11 }
 0x4d9   : > { %p1370_p0 = pnand %p1369_p13, %p1363_p8 }
 0x4db   : > { %1373 = shalt.err (!%p1370_p0)
}
 0x4dc   : > { %s1415_s21 = smov 128   ;;  %s1416_s24 = smov 384  }
 0x4dd   : > { %s1417_s30 = smov 8  }
 0x4de   : > { %1278 = dma.vmem_to_hbm [thread:$0]  (%p1516_p5), %s1674_s13, 256, %s1679_s26, %s1681_s29, %s1415_s21, %s1416_s24, %s1417_s30  }
 0x4df PF: > { %p1284_p1 = scmp.ge.s32.totalorder %s1408_s20, 2  ;;  %s1019_s12 = sand.u32 1, %s1396_s17  }
 0x4e0   : > { %s1020_s25 = scalar_lea.sflag [#allocation3], %s1019_s12 }
 0x4e1   : > { %p1281_p2 = pnand %p1284_p1, %p1520_p6 }
 0x4e3   : > { %1391 = dma.done.wait (!%p1281_p2), %s1020_s25, 256  }
 0x4e4   : > { %1393 = vsyncadd (!%p1281_p2), %s1020_s25, 4294967040  ;;  %s1739_s14 = sld [smem:[#allocation5_spill]]  ;;  %p21_p3 = scmp.ge.s32.totalorder %s1503_s23, 5  }
 0x4e5   : > { %s1740_s17 = smov %s1400_s18  ;;  %s1741_s18 = smov %s1404_s19 }
 0x4e6   : > { %s1743_s20 = smov %s1503_s23  ;;  %23 = sbr.rel (!%p21_p3) target bundleno = 3 (0x3), region = 99 }
 0x4ea   : > { %s1742_s19 = smov %s1739_s14 }
 0x4ed   :  { %1025 = vsyncpa [#allocation3], 1 }
 0x4ee   :  { %1027 = vsyncpa [#allocation3 + $0x1], 1 }

</bundles_post_ra>
